<compile_context>
chip_gen: v7x
topology: tpu7x:2x2x1
jax: 0.10.0
libtpu: 0.0.40
codegen_flags: <defaults>
</compile_context>

<pallas_src>
import jax
import jax.numpy as jnp
from jax.experimental import pallas as pl
from jax.experimental.pallas import tpu as pltpu


def _round_up(x, m):
    return ((x + m - 1) // m) * m


def _vmem_budget_bytes():
    """Per-generation VMEM budget: ~60% of physical VMEM (64 MiB fallback = v7x)."""
    cap = 64 * 1024 * 1024
    try:
        cap = int(pltpu.get_tpu_info().vmem_capacity_bytes)
    except Exception:
        pass
    return int(cap * 0.6)


def _pick_tile(dim, unit, max_tile):
    """Tile <= max_tile, multiple of `unit`, minimizing padded extent (ties -> larger)."""
    if dim <= max_tile:
        return max(_round_up(dim, unit), unit)
    cands = [c for c in (128, 256, 512, 1024, 2048) if c % unit == 0 and c <= max_tile]
    if not cands:
        return max_tile
    return min(cands, key=lambda t: (_round_up(dim, t), -t))


def _vmem_footprint(tm, tn, tk, r_pad, itemsize):
    """Approximate VMEM use of the main kernel (double-buffered tiles + scratch)."""
    return (2 * tm * tk * itemsize          # x tile
            + 2 * tk * tn * itemsize        # W tile
            + 2 * 8 * tn * itemsize         # bias tile (padded to 8 sublanes)
            + 2 * tm * r_pad * 4            # xa tile (f32)
            + 2 * r_pad * tn * 4            # alpha*B tile (f32)
            + 2 * tm * tn * itemsize        # out tile
            + tm * tn * 4)                  # f32 accumulator scratch


# --------------------------------------------------------------------------
# Kernels
# --------------------------------------------------------------------------
def _down_proj_kernel(x_ref, a_ref, xa_ref, acc_ref):
    """xa = x @ A (rank padded to r_pad lanes).  Grid = (M tiles, K tiles)."""
    k = pl.program_id(1)

    @pl.when(k == 0)
    def _init():
        acc_ref[...] = jnp.zeros_like(acc_ref)

    acc_ref[...] += jnp.dot(x_ref[...], a_ref[...],
                            preferred_element_type=jnp.float32)

    @pl.when(k == pl.num_programs(1) - 1)
    def _finalize():
        xa_ref[...] = acc_ref[...]


def _lora_linear_kernel(x_ref, w_ref, b_ref, xa_ref, bb_ref, o_ref, acc_ref):
    """out = x @ W + bias + xa @ (alpha*B).  Grid = (M tiles, N tiles, K tiles)."""
    k = pl.program_id(2)

    @pl.when(k == 0)
    def _init():
        # Bias folded into the accumulator init (drops an epilogue VPU add).
        acc_ref[...] = jnp.broadcast_to(b_ref[...], acc_ref.shape).astype(jnp.float32)

    acc_ref[...] += jnp.dot(x_ref[...], w_ref[...],
                            preferred_element_type=jnp.float32)

    @pl.when(k == pl.num_programs(2) - 1)
    def _finalize():
        # Up-projection once per output tile (xa and alpha*B are both f32).
        lora = jnp.dot(xa_ref[...], bb_ref[...],
                       preferred_element_type=jnp.float32)
        o_ref[...] = (acc_ref[...] + lora).astype(o_ref.dtype)


# --------------------------------------------------------------------------
# Wrapper
# --------------------------------------------------------------------------
def linear_with_lora(x, w, b, a_mat, b_mat, alpha,
                     *, tm_max=1024, tn_max=1024, tk_max=512):
    """Fused LinearWithLoRA forward.

    x:     (..., in_dim)
    w:     (in_dim, out_dim)   -- nn.Linear weight pre-transposed
    b:     (out_dim,)
    a_mat: (in_dim, rank)
    b_mat: (rank, out_dim)
    """
    orig_shape = x.shape
    in_dim = orig_shape[-1]
    x2 = x.reshape(-1, in_dim)                              # (M, K)
    M, K = x2.shape
    Kw, N = w.shape
    assert Kw == K, "weight in_dim mismatch"
    r = a_mat.shape[1]

    out_dtype = x.dtype
    itemsize = jnp.dtype(out_dtype).itemsize
    sub = 8 if itemsize >= 4 else 16                        # sublane granularity

    r_pad = _round_up(r, 128)                               # lane-dense rank (keep at 128)

    # Tile selection: minimize padding waste within the per-generation VMEM budget.
    tm = _pick_tile(M, sub, tm_max)
    tn = _pick_tile(N, 128, tn_max)
    tk = _pick_tile(K, 128, tk_max)

    budget = _vmem_budget_bytes()
    while (_vmem_footprint(tm, tn, tk, r_pad, itemsize) > budget
           and (tm > sub or tn > 128 or tk > 128)):
        if tn >= max(tm, tk) and tn > 128:
            tn = max(128, tn // 2)
        elif tm >= tk and tm > sub:
            tm = max(sub, _round_up(tm // 2, sub))
        else:
            tk = max(128, tk // 2)

    Mp, Np, Kp = _round_up(M, tm), _round_up(N, tn), _round_up(K, tk)

    def pad2(arr, rows, cols):
        pr, pc = rows - arr.shape[0], cols - arr.shape[1]
        return arr if (pr == 0 and pc == 0) else jnp.pad(arr, ((0, pr), (0, pc)))

    f32 = jnp.float32
    x_p = pad2(x2, Mp, Kp)
    w_p = pad2(w, Kp, Np)
    b_p = pad2(b.reshape(1, N), 1, Np)
    a_p = pad2(a_mat.astype(f32), Kp, r_pad)
    bb_p = pad2(alpha * b_mat.astype(f32), r_pad, Np)       # alpha folded in f32

    vmem_limit = int(min(max(budget, 32 * 1024 * 1024), 100 * 1024 * 1024))

    # ---- Pass 1: LoRA down-projection xa = x @ A (once, over M/K tiles only) ----
    down_cost = pl.CostEstimate(
        flops=2 * M * K * r_pad, transcendentals=0,
        bytes_accessed=x_p.size * itemsize + a_p.size * 4 + Mp * r_pad * 4)

    xa_p = pl.pallas_call(
        _down_proj_kernel,
        out_shape=jax.ShapeDtypeStruct((Mp, r_pad), jnp.float32),
        grid_spec=pltpu.PrefetchScalarGridSpec(
            num_scalar_prefetch=0,
            grid=(Mp // tm, Kp // tk),
            in_specs=[
                pl.BlockSpec((tm, tk), lambda i, k: (i, k)),       # x tile
                pl.BlockSpec((tk, r_pad), lambda i, k: (k, 0)),    # A tile
            ],
            out_specs=pl.BlockSpec((tm, r_pad), lambda i, k: (i, 0)),
            scratch_shapes=[pltpu.VMEM((tm, r_pad), jnp.float32)],
        ),
        compiler_params=pltpu.CompilerParams(
            dimension_semantics=("parallel", "arbitrary"),
            vmem_limit_bytes=vmem_limit),
        cost_estimate=down_cost,
    )(x_p, a_p)

    # ---- Pass 2: fused base GEMM + bias + LoRA up-projection ----
    main_cost = pl.CostEstimate(
        flops=2 * M * K * N + 2 * M * r_pad * N,
        transcendentals=0,
        bytes_accessed=((x_p.size * (Np // tn) + w_p.size * (Mp // tm)) * itemsize
                        + b_p.size * itemsize + xa_p.size * 4 + bb_p.size * 4
                        + Mp * Np * itemsize))

    out = pl.pallas_call(
        _lora_linear_kernel,
        out_shape=jax.ShapeDtypeStruct((Mp, Np), out_dtype),
        grid_spec=pltpu.PrefetchScalarGridSpec(
            num_scalar_prefetch=0,
            grid=(Mp // tm, Np // tn, Kp // tk),
            in_specs=[
                pl.BlockSpec((tm, tk), lambda i, j, k: (i, k)),      # x tile
                pl.BlockSpec((tk, tn), lambda i, j, k: (k, j)),      # W tile
                pl.BlockSpec((1, tn), lambda i, j, k: (0, j)),       # bias tile
                pl.BlockSpec((tm, r_pad), lambda i, j, k: (i, 0)),   # xa tile
                pl.BlockSpec((r_pad, tn), lambda i, j, k: (0, j)),   # alpha*B tile
            ],
            out_specs=pl.BlockSpec((tm, tn), lambda i, j, k: (i, j)),
            scratch_shapes=[pltpu.VMEM((tm, tn), jnp.float32)],
        ),
        compiler_params=pltpu.CompilerParams(
            dimension_semantics=("parallel", "parallel", "arbitrary"),
            vmem_limit_bytes=vmem_limit),
        cost_estimate=main_cost,
    )(x_p, w_p, b_p, xa_p, bb_p)

    return out[:M, :N].reshape(*orig_shape[:-1], N)


def _reference(x, w, b, a_mat, b_mat, alpha):
    return x @ w + b + alpha * ((x @ a_mat) @ b_mat)


if __name__ == "__main__":
    key = jax.random.PRNGKey(0)

    def make_case(key, batch, seq, in_dim, out_dim, rank, alpha):
        kx, kw, kb, ka, kbb = jax.random.split(key, 5)
        x = jax.random.normal(kx, (batch, seq, in_dim), dtype=jnp.float32)
        bound_w = 1.0 / (in_dim ** 0.5)
        # nn.Linear keeps weight as (out, in); pre-transpose to (in, out).
        w_t = jax.random.uniform(kw, (out_dim, in_dim), dtype=jnp.float32,
                                 minval=-bound_w, maxval=bound_w)
        w = w_t.T
        bias = jax.random.uniform(kb, (out_dim,), dtype=jnp.float32,
                                  minval=-bound_w, maxval=bound_w)
        bound_a = (6.0 / (1.0 + 5.0) / in_dim) ** 0.5
        a_mat = jax.random.uniform(ka, (in_dim, rank), dtype=jnp.float32,
                                   minval=-bound_a, maxval=bound_a)
        # Module inits B to zeros; use small nonzero B so the LoRA path is exercised.
        b_mat = 0.01 * jax.random.normal(kbb, (rank, out_dim), dtype=jnp.float32)
        return x, w, bias, a_mat, b_mat, alpha

    k1, k2, k3 = jax.random.split(key, 3)

    # Case 1: small shapes consistent with the module.
    args1 = make_case(k1, batch=2, seq=8, in_dim=32, out_dim=32, rank=4, alpha=2.0)
    out1 = jax.block_until_ready(linear_with_lora(*args1))
    ref1 = _reference(*args1)
    assert out1.shape == ref1.shape
    assert jnp.allclose(out1, ref1, atol=1e-5, rtol=1e-5), "case 1 mismatch"

    # Case 2: non-tile-aligned shapes to exercise padding / cdiv tiling.
    args2 = make_case(k2, batch=3, seq=5, in_dim=40, out_dim=48, rank=4, alpha=0.5)
    out2 = jax.block_until_ready(linear_with_lora(*args2))
    ref2 = _reference(*args2)
    assert out2.shape == ref2.shape
    assert jnp.allclose(out2, ref2, atol=1e-5, rtol=1e-5), "case 2 mismatch"

    # Case 3: multi-step K reduction (Kp // tk > 1) to exercise the accumulator path.
    args3 = make_case(k3, batch=2, seq=80, in_dim=640, out_dim=192, rank=8, alpha=0.25)
    out3 = jax.block_until_ready(linear_with_lora(*args3))
    ref3 = _reference(*args3)
    assert out3.shape == ref3.shape
    assert jnp.allclose(out3, ref3, atol=2e-4, rtol=2e-4), "case 3 mismatch"

    print("KERNEL_OK")
</pallas_src>

<mosaic_0001>
module attributes {stable_mosaic.version = 11 : i64} {
  func.func @_down_proj_kernel(%arg0: i32, %arg1: i32, %arg2: memref<16x128xf32, #tpu.memory_space<vmem>>, %arg3: memref<128x128xf32, #tpu.memory_space<vmem>>, %arg4: memref<16x128xf32, #tpu.memory_space<vmem>>, %arg5: memref<16x128xf32, #tpu.memory_space<vmem>>) attributes {dimension_semantics = [#tpu.dimension_semantics<parallel>, #tpu.dimension_semantics<arbitrary>], iteration_bounds = array<i64: 1, 1>, scalar_prefetch = 0 : i64, scratch_operands = 1 : i64, tpu.core_type = #tpu.core_type<tc>, window_params = [{transform_indices = @transform_0, window_bounds = array<i64: 16, 128>}, {transform_indices = @transform_1, window_bounds = array<i64: 128, 128>}, {transform_indices = @transform_2, window_bounds = array<i64: 16, 128>}]} {
    %c0_i32 = arith.constant 0 : i32
    %0 = arith.cmpi eq, %arg1, %c0_i32 : i32
    %1 = arith.extui %0 : i1 to i32
    %c0_i32_0 = arith.constant 0 : i32
    %2 = arith.cmpi ne, %1, %c0_i32_0 : i32
    scf.if %2 {
      %cst_10 = arith.constant 0.000000e+00 : f32
      %12 = vector.broadcast %cst_10 : f32 to vector<16x128xf32>
      %c0_11 = arith.constant 0 : index
      %c0_12 = arith.constant 0 : index
      %13 = vector.load %arg5[%c0_11, %c0_12] : memref<16x128xf32, #tpu.memory_space<vmem>>, vector<16x128xf32>
      tpu.vector_store %arg5[%c0_11, %c0_12], %12 {strides = array<i32>} : memref<16x128xf32, #tpu.memory_space<vmem>>, vector<16x128xf32>,
    } else {
    }
    %c0 = arith.constant 0 : index
    %c0_1 = arith.constant 0 : index
    %3 = vector.load %arg5[%c0, %c0_1] : memref<16x128xf32, #tpu.memory_space<vmem>>, vector<16x128xf32>
    %c0_2 = arith.constant 0 : index
    %c0_3 = arith.constant 0 : index
    %4 = vector.load %arg2[%c0_2, %c0_3] : memref<16x128xf32, #tpu.memory_space<vmem>>, vector<16x128xf32>
    %c0_4 = arith.constant 0 : index
    %c0_5 = arith.constant 0 : index
    %5 = vector.load %arg3[%c0_4, %c0_5] : memref<128x128xf32, #tpu.memory_space<vmem>>, vector<128x128xf32>
    %cst = arith.constant dense<0.000000e+00> : vector<16x128xf32>
    %6 = tpu.matmul %4, %5, %cst {dimension_numbers = #tpu.dot_dimension_numbers<[1], [0], [0], [1], [0, 0, 1, 1], [], []>} : vector<16x128xf32>, vector<128x128xf32>, vector<16x128xf32> -> vector<16x128xf32>
    %7 = arith.addf %3, %6 : vector<16x128xf32>
    %c0_6 = arith.constant 0 : index
    %c0_7 = arith.constant 0 : index
    %8 = vector.load %arg5[%c0_6, %c0_7] : memref<16x128xf32, #tpu.memory_space<vmem>>, vector<16x128xf32>
    tpu.vector_store %arg5[%c0_6, %c0_7], %7 {strides = array<i32>} : memref<16x128xf32, #tpu.memory_space<vmem>>, vector<16x128xf32>,
    %c0_i32_8 = arith.constant 0 : i32
    %9 = arith.cmpi eq, %arg1, %c0_i32_8 : i32
    %10 = arith.extui %9 : i1 to i32
    %c0_i32_9 = arith.constant 0 : i32
    %11 = arith.cmpi ne, %10, %c0_i32_9 : i32
    scf.if %11 {
      %c0_10 = arith.constant 0 : index
      %c0_11 = arith.constant 0 : index
      %12 = vector.load %arg5[%c0_10, %c0_11] : memref<16x128xf32, #tpu.memory_space<vmem>>, vector<16x128xf32>
      %c0_12 = arith.constant 0 : index
      %c0_13 = arith.constant 0 : index
      %13 = vector.load %arg4[%c0_12, %c0_13] : memref<16x128xf32, #tpu.memory_space<vmem>>, vector<16x128xf32>
      tpu.vector_store %arg4[%c0_12, %c0_13], %12 {strides = array<i32>} : memref<16x128xf32, #tpu.memory_space<vmem>>, vector<16x128xf32>,
    } else {
    }
    return
  }
  func.func @transform_0(%arg0: i32, %arg1: i32) -> (i32, i32) {
    %c0_i32 = arith.constant 0 : i32
    return %arg0, %arg1 : i32, i32
  }
  func.func @transform_1(%arg0: i32, %arg1: i32) -> (i32, i32) {
    %c0_i32 = arith.constant 0 : i32
    %c0_i32_0 = arith.constant 0 : i32
    return %arg1, %c0_i32 : i32, i32
  }
  func.func @transform_2(%arg0: i32, %arg1: i32) -> (i32, i32) {
    %c0_i32 = arith.constant 0 : i32
    %c0_i32_0 = arith.constant 0 : i32
    return %arg0, %c0_i32 : i32, i32
  }
}

</mosaic_0001>

<bundles_post_ra>
// kernel: tpu_custom_call.1
= control target key start
LH: loop header
LB: loop body
LE: loop exit
PB: predicated region body
PF: predicated region fallthrough
CT: control target
= control target key end

     0   :  { %7 = vsyncpa [#allocation4], 0  ;;  %s397_s0 = inlined_call_operand.hbm [shape: f32[16,128], index: 0, kind: input, shape index: {}]   ;;  %s398_s1 = inlined_call_operand.hbm [shape: f32[128,128], index: 1, kind: input, shape index: {}]   ;;  %s399_s2 = inlined_call_operand.hbm [shape: f32[16,128], index: 2, kind: output, shape index: {}]  }
   0x1   :  { %8 = vsyncpa [#allocation7], 0 }
   0x2   :  { %9 = vsyncpa [#allocation5], 0  ;;  %s332_s9 = smov [#allocation3]   ;;  %s260_s13 = scalar_lea.hbm %s397_s0, 256 }
   0x3   :  { %s15_s10 = sshll.u32 %s332_s9, 4  ;;  %p261_p0 = scmp.ne.s32.totalorder %s397_s0, %s260_s13  ;;  %s16_s10 = int_to_ptr.vmem [resolvable:$true] %s15_s10 }
   0x4   :  { %p264_p1 = scmp.lt.u32.totalorder %s260_s13, %s397_s0 }
   0x6   :  { %p266_p2 = pnand %p264_p1, %p261_p0 }
   0x8   :  { %269 = shalt.err (!%p266_p2)
}
   0x9   :  { %s270_s18 = scalar_lea.vmem %s16_s10, 256  ;;  %p275_p4 = scmp.lt.s32.totalorder %s16_s10, %s16_s10 }
   0xa   :  { %p271_p3 = scmp.ne.s32.totalorder %s16_s10, %s270_s18  ;;  %p276_p5 = scmp.lt.s32.totalorder %s270_s18, %s270_s18 }
   0xc   :  { %p277_p6 = por %p276_p5, %p275_p4 }
   0xe   :  { %p278_p7 = pnand %p277_p6, %p271_p3 }
  0x10   :  { %281 = shalt.err (!%p278_p7)
}
  0x11   :  { %s333_s19 = smov 128   ;;  %s334_s20 = smov 8  }
  0x12   :  { %21 = dma.hbm_to_vmem [thread:$0]  %s397_s0, 256, %s16_s10, [#allocation4], %s333_s19, %s333_s19, %s334_s20  }
  0x13   :  { %s335_s23 = smov [#allocation6]   ;;  %s282_s27 = scalar_lea.hbm %s398_s1, 2048 }
  0x14   :  { %s27_s24 = sshll.u32 %s335_s23, 4  ;;  %p283_p8 = scmp.ne.s32.totalorder %s398_s1, %s282_s27  ;;  %s28_s24 = int_to_ptr.vmem [resolvable:$true] %s27_s24 }
  0x15   :  { %p286_p9 = scmp.lt.u32.totalorder %s282_s27, %s398_s1 }
  0x17   :  { %p288_p10 = pnand %p286_p9, %p283_p8 }
  0x19   :  { %291 = shalt.err (!%p288_p10)
}
  0x1a   :  { %s292_s4 = scalar_lea.vmem %s28_s24, 2048  ;;  %p297_p12 = scmp.lt.s32.totalorder %s28_s24, %s28_s24 }
  0x1b   :  { %p293_p11 = scmp.ne.s32.totalorder %s28_s24, %s292_s4  ;;  %p298_p13 = scmp.lt.s32.totalorder %s292_s4, %s292_s4 }
  0x1d   :  { %p299_p0 = por %p298_p13, %p297_p12 }
  0x1f   :  { %p300_p1 = pnand %p299_p0, %p293_p11 }
  0x21   :  { %303 = shalt.err (!%p300_p1)
}
  0x22   :  { %33 = dma.hbm_to_vmem [thread:$0]  %s398_s1, 2048, %s28_s24, [#allocation7], %s333_s19, %s333_s19, %s334_s20  }
  0x23   :  { %326 = dma.done.wait [#allocation4], 256  }
  0x24   :  { %327 = vsyncadd [#allocation4], 4294967040 }
  0x25   :  { %328 = dma.done.wait [#allocation7], 2048  }
  0x26   :  { %329 = vsyncadd [#allocation7], 4294965248  ;;  %v50_v0 = vld [vmem:[#allocation6] sm:$0xff]  ;;  %v51_v1 = vld [vmem:[#allocation6 + $0x8] sm:$0xff]  ;;  %s336_s1 = smov [#allocation8]  }
  0x27   :  { %v52_v2 = vld [vmem:[#allocation6 + $0x10] sm:$0xff]  ;;  %v223_v3 = vpack.c.bf16 %v51_v1, %v50_v0  ;;  %v53_v4 = vld [vmem:[#allocation6 + $0x18] sm:$0xff]  ;;  %v54_v6 = vld [vmem:[#allocation6 + $0x20] sm:$0xff]  ;;  %s157_s6 = sshll.u32 %s336_s1, 4  ;;  %s158_s6 = int_to_ptr.vmem [resolvable:$true] %s157_s6 }
  0x28   :  { %v227_v5 = vpack.c.bf16 %v53_v4, %v52_v2  ;;  %v55_v7 = vld [vmem:[#allocation6 + $0x28] sm:$0xff]  ;;  %v48_v9 = vld [vmem:[#allocation3] sm:$0xff]  ;;  %v57_v11 = vld [vmem:[#allocation6 + $0x38] sm:$0xff]  ;;  %s304_s7 = scalar_lea.vmem %s158_s6, 256  ;;  %p309_p3 = scmp.lt.s32.totalorder %s158_s6, %s158_s6 }
  0x29   :  { %224 = vmatprep.subr.bf16.mxu0 %v223_v3  ;;  %v231_v8 = vpack.c.bf16 %v55_v7, %v54_v6  ;;  %v56_v10 = vld [vmem:[#allocation6 + $0x30] sm:$0xff]  ;;  %220 = vmatprep.mubr.f32.mxu0 %v48_v9  ;;  %v58_v13 = vld [vmem:[#allocation6 + $0x40] sm:$0xff]  ;;  %v59_v14 = vld [vmem:[#allocation6 + $0x48] sm:$0xff]  ;;  %p305_p2 = scmp.ne.s32.totalorder %s158_s6, %s304_s7  ;;  %p310_p4 = scmp.lt.s32.totalorder %s304_s7, %s304_s7 }
  0x2a   :  { %226 = vmatpush3.bf16.msra.mxu0 %v223_v3  ;;  %v235_v12 = vpack.c.bf16 %v57_v11, %v56_v10  ;;  %v239_v15 = vpack.c.bf16 %v59_v14, %v58_v13  ;;  %v60_v16 = vld [vmem:[#allocation6 + $0x50] sm:$0xff]  ;;  %v61_v17 = vld [vmem:[#allocation6 + $0x58] sm:$0xff]  ;;  %v62_v19 = vld [vmem:[#allocation6 + $0x60] sm:$0xff] }
  0x2b   :  { %228 = vmatprep.subr.bf16.mxu0 %v227_v5  ;;  %v243_v18 = vpack.c.bf16 %v61_v17, %v60_v16  ;;  %v63_v20 = vld [vmem:[#allocation6 + $0x68] sm:$0xff]  ;;  %v64_v22 = vld [vmem:[#allocation6 + $0x70] sm:$0xff]  ;;  %v65_v23 = vld [vmem:[#allocation6 + $0x78] sm:$0xff]  ;;  %p311_p5 = por %p310_p4, %p309_p3 }
  0x2c   :  { %v247_v21 = vpack.c.bf16 %v63_v20, %v62_v19  ;;  %v251_v24 = vpack.c.bf16 %v65_v23, %v64_v22  ;;  %v49_v25 = vld [vmem:[#allocation3 + $0x8] sm:$0xff] }
  0x2d   :  { %p312_p6 = pnand %p311_p5, %p305_p2 }
  0x2e   :  { %230 = vmatpush3.bf16.msra.mxu0 %v227_v5 }
  0x2f   :  { %232 = vmatprep.subr.bf16.mxu0 %v231_v8 }
  0x32   :  { %234 = vmatpush3.bf16.msra.mxu0 %v231_v8 }
  0x33   :  { %236 = vmatprep.subr.bf16.mxu0 %v235_v12 }
  0x36   :  { %238 = vmatpush3.bf16.msra.mxu0 %v235_v12 }
  0x37   :  { %240 = vmatprep.subr.bf16.mxu0 %v239_v15 }
  0x3a   :  { %242 = vmatpush3.bf16.msra.mxu0 %v239_v15 }
  0x3b   :  { %244 = vmatprep.subr.bf16.mxu0 %v243_v18 }
  0x3e   :  { %246 = vmatpush3.bf16.msra.mxu0 %v243_v18 }
  0x3f   :  { %248 = vmatprep.subr.bf16.mxu0 %v247_v21 }
  0x42   :  { %250 = vmatpush3.bf16.msra.mxu0 %v247_v21 }
  0x43   :  { %252 = vmatprep.subr.bf16.mxu0 %v251_v24 }
  0x46   :  { %254 = vmatpush3.bf16.msra.mxu0 %v251_v24 }
  0x49   :  { %221 = vmatmul.mubr.f32.vlgmr.msra.gmra.mrb[0].mxu0 %v49_v25 }
 0x11c   :  { %v222_v26 = vpop.f32.mrb[0].mxu0 }
 0x11d   :  { %151 = vst [vmem:[#allocation8 + $0x8] sm:$0xff] %v222_v26  ;;  %v132_v27 = vpop.f32.mrb[1].mxu0 }
 0x11e   :  { %150 = vst [vmem:[#allocation8] sm:$0xff] %v132_v27 }
 0x11f   :  { %315 = shalt.err (!%p312_p6)
}
 0x120   :  { %s316_s10 = scalar_lea.hbm %s399_s2, 256 }
 0x121   :  { %p317_p7 = scmp.ne.s32.totalorder %s399_s2, %s316_s10  ;;  %p320_p8 = scmp.lt.u32.totalorder %s316_s10, %s399_s2 }
 0x123   :  { %p322_p9 = pnand %p320_p8, %p317_p7 }
 0x125   :  { %325 = shalt.err (!%p322_p9)
}
 0x126   :  { %163 = dma.vmem_to_hbm [thread:$0]  %s158_s6, 256, %s399_s2, [#allocation5], %s333_s19, %s333_s19, %s334_s20  }
 0x127   :  { %330 = dma.done.wait [#allocation5], 256  }
 0x128   :  { %331 = vsyncadd [#allocation5], 4294967040 }
 0x129   :  { %167 = vsyncpa [#allocation4], 1 }
 0x12a   :  { %168 = vsyncpa [#allocation7], 1 }
 0x12b   :  { %169 = vsyncpa [#allocation5], 1 }

</bundles_post_ra>
